<compile_context>
chip_gen: v6e
topology: v6e:2x2x1
jax: 0.10.0
libtpu: 0.0.40
codegen_flags: <defaults>
</compile_context>

<pallas_src>
import functools

import jax
import jax.numpy as jnp
from jax import lax
from jax.experimental import pallas as pl
from jax.experimental.pallas import tpu as pltpu


# Branch order is fixed by the module: (sym, asym, asym, sym).
_BRANCH_HAS_BETA = (True, False, False, True)


def _ln22_kernel(gamma_ref, beta_ref,
                 x0_ref, x1_ref, x2_ref, x3_ref,
                 o0_ref, o1_ref, o2_ref, o3_ref,
                 *, eps, inv_ch):
    """One grid step: LayerNorm a (tr, Ch) row-block of each of the 4 branches."""
    g_all = gamma_ref[...]                       # (4, Ch) float32
    b_all = beta_ref[...]                        # (4, Ch) float32
    pairs = ((x0_ref, o0_ref), (x1_ref, o1_ref),
             (x2_ref, o2_ref), (x3_ref, o3_ref))
    for i, (x_ref, o_ref) in enumerate(pairs):
        x = x_ref[...].astype(jnp.float32)       # (tr, Ch), lane-dense
        # One-pass statistics: both XLU lane-reductions issue back-to-back,
        # then the EUP rsqrt overlaps with the next branch's work.
        s1 = jnp.sum(x, axis=-1, keepdims=True)
        s2 = jnp.sum(x * x, axis=-1, keepdims=True)
        mean = s1 * inv_ch
        var = jnp.maximum(s2 * inv_ch - mean * mean, 0.0)
        inv = lax.rsqrt(var + eps)               # (tr, 1)
        g = g_all[i][None, :]                    # (1, Ch) -> sublane broadcast
        y = (x - mean) * inv * g
        if _BRANCH_HAS_BETA[i]:
            y = y + b_all[i][None, :]
        o_ref[...] = y.astype(o_ref.dtype)


def _tpu_vmem_capacity_bytes():
    try:
        return int(pltpu.get_tpu_info().vmem_capacity_bytes)
    except Exception:
        return 64 * 1024 * 1024                  # conservative fallback (v7x-sized)


def _pick_row_tile(rows, ch, itemsize, block_budget):
    """Row-tile for one branch's (tr, Ch) block.

    Dtype-aligned sublane count (8/16/32 for 4/2/1-byte), big enough to
    amortize the ~0.35us per-step overhead, small enough for VMEM, and split
    into >=2 grid steps when possible (pipeline overlap / v7x megacore).
    """
    align = {4: 8, 2: 16, 1: 32}.get(itemsize, 8)
    if rows <= align:
        return rows                              # one full block: always legal
    max_tr = max(align, (block_budget // max(1, ch * itemsize)) // align * align)
    half = -(-rows // 2)                         # ceil(rows / 2): >=2 grid steps
    half = -(-half // align) * align             # round up to sublane alignment
    return int(min(max_tr, half))


def layer_norm_22(xs, gamma_sym, beta_sym, gamma_asym, *, eps=1e-5):
    """Fused LayerNorm22 forward: four (B, N, Ch) inputs -> four outputs."""
    x0, x1, x2, x3 = xs
    B, N, Ch = x0.shape
    for x in xs:
        assert x.shape == (B, N, Ch) and x.dtype == x0.dtype
    R = B * N
    dtype = x0.dtype
    itemsize = jnp.dtype(dtype).itemsize

    # Affine tables stay in float32 (PyTorch keeps LayerNorm params in fp32).
    # Branch order (sym, asym, asym, sym); asym has no bias.
    ones = jnp.ones((Ch,), jnp.float32)
    zeros = jnp.zeros((Ch,), jnp.float32)
    g_sym = ones if gamma_sym is None else gamma_sym.astype(jnp.float32)
    g_asym = ones if gamma_asym is None else gamma_asym.astype(jnp.float32)
    b_sym = zeros if beta_sym is None else beta_sym.astype(jnp.float32)
    gamma4 = jnp.stack([g_sym, g_asym, g_asym, g_sym], axis=0)   # (4, Ch) ~ tiny
    beta4 = jnp.stack([b_sym, zeros, zeros, b_sym], axis=0)      # (4, Ch) ~ tiny

    # Row-fold each branch: (B, N, Ch) -> (R, Ch).  This merges leading dims of
    # a contiguous array (bitcast reshape) — no extra HBM traffic, unlike
    # stacking the four branches into one slab.
    xr = tuple(x.reshape(R, Ch) for x in (x0, x1, x2, x3))

    # Generation-aware VMEM budgeting: per grid step we move 4 input + 4 output
    # blocks (double-buffered => 16 live blocks) plus a few f32 intermediates,
    # so total footprint ~= 20x the per-branch block size.
    vmem_cap = _tpu_vmem_capacity_bytes()
    block_budget = max(512 * 1024, min(2 * 1024 * 1024, vmem_cap // 48))
    tr = _pick_row_tile(R, Ch, itemsize, block_budget)
    grid = (pl.cdiv(R, tr),)          # partial last block is masked (per-row op)
    vmem_limit = int(min(vmem_cap * 3 // 4, 24 * block_budget + (8 << 20)))

    row_spec = pl.BlockSpec((tr, Ch), lambda r: (r, 0))
    tbl_spec = pl.BlockSpec((4, Ch), lambda r: (0, 0))       # grid-invariant

    outs = pl.pallas_call(
        functools.partial(_ln22_kernel, eps=float(eps), inv_ch=1.0 / Ch),
        out_shape=tuple(jax.ShapeDtypeStruct((R, Ch), dtype) for _ in range(4)),
        grid_spec=pltpu.PrefetchScalarGridSpec(
            num_scalar_prefetch=0,
            grid=grid,
            in_specs=[tbl_spec, tbl_spec,
                      row_spec, row_spec, row_spec, row_spec],
            out_specs=[row_spec, row_spec, row_spec, row_spec],
        ),
        compiler_params=pltpu.CompilerParams(
            dimension_semantics=("parallel",),
            vmem_limit_bytes=vmem_limit,
        ),
    )(gamma4, beta4, *xr)

    return tuple(o.reshape(B, N, Ch) for o in outs)


class LayerNorm22Pallas:
    """JAX/Pallas port of LayerNorm22."""

    def __init__(self, channels, eps=1e-5, elementwise_affine=True, bias=True,
                 dtype=jnp.float32):
        ch = channels // 2
        self.ch = ch
        self.eps = eps
        self.elementwise_affine = elementwise_affine
        if elementwise_affine:
            # nn.LayerNorm default init: weight=1, bias=0.
            self.gamma_sym = jnp.ones((ch,), dtype)
            self.gamma_asym = jnp.ones((ch,), dtype)
            self.beta_sym = jnp.zeros((ch,), dtype) if bias else None
        else:
            self.gamma_sym = None
            self.gamma_asym = None
            self.beta_sym = None

    def __call__(self, xs):
        return layer_norm_22(xs, self.gamma_sym, self.beta_sym,
                             self.gamma_asym, eps=self.eps)


def _reference(xs, mod):
    """Pure-JAX reference matching the PyTorch forward exactly (two-pass var)."""

    def ln(x, gamma, beta):
        x32 = x.astype(jnp.float32)
        mean = x32.mean(-1, keepdims=True)
        var = ((x32 - mean) ** 2).mean(-1, keepdims=True)
        y = (x32 - mean) / jnp.sqrt(var + mod.eps)
        if gamma is not None:
            y = y * gamma.astype(jnp.float32)
        if beta is not None:
            y = y + beta.astype(jnp.float32)
        return y.astype(x.dtype)

    return (ln(xs[0], mod.gamma_sym, mod.beta_sym),
            ln(xs[1], mod.gamma_asym, None),
            ln(xs[2], mod.gamma_asym, None),
            ln(xs[3], mod.gamma_sym, mod.beta_sym))


if __name__ == "__main__":
    channels = 256                 # -> per-branch channel width Ch = 128 (lane-dense)
    B, N = 2, 32                   # batch, sequence (patches)
    Ch = channels // 2

    key = jax.random.PRNGKey(0)
    ks = jax.random.split(key, 7)
    xs = tuple(jax.random.normal(ks[i], (B, N, Ch), jnp.float32) for i in range(4))

    mod = LayerNorm22Pallas(channels, eps=1e-5, elementwise_affine=True, bias=True)
    # Non-trivial affine params so the check exercises gamma/beta paths.
    mod.gamma_sym = 1.0 + 0.1 * jax.random.normal(ks[4], (Ch,), jnp.float32)
    mod.gamma_asym = 1.0 + 0.1 * jax.random.normal(ks[5], (Ch,), jnp.float32)
    mod.beta_sym = 0.1 * jax.random.normal(ks[6], (Ch,), jnp.float32)

    outs = jax.block_until_ready(mod(xs))

    refs = _reference(xs, mod)
    for o, r in zip(outs, refs):
        assert o.shape == r.shape
        assert jnp.allclose(o, r, atol=2e-5, rtol=1e-5), "mismatch vs reference"

    print("KERNEL_OK")
</pallas_src>

<mosaic_0001>
module attributes {stable_mosaic.version = 11 : i64} {
  func.func @_ln22_kernel(%arg0: i32, %arg1: memref<4x128xf32, #tpu.memory_space<vmem>>, %arg2: memref<4x128xf32, #tpu.memory_space<vmem>>, %arg3: memref<32x128xf32, #tpu.memory_space<vmem>>, %arg4: memref<32x128xf32, #tpu.memory_space<vmem>>, %arg5: memref<32x128xf32, #tpu.memory_space<vmem>>, %arg6: memref<32x128xf32, #tpu.memory_space<vmem>>, %arg7: memref<32x128xf32, #tpu.memory_space<vmem>>, %arg8: memref<32x128xf32, #tpu.memory_space<vmem>>, %arg9: memref<32x128xf32, #tpu.memory_space<vmem>>, %arg10: memref<32x128xf32, #tpu.memory_space<vmem>>) attributes {dimension_semantics = [#tpu.dimension_semantics<parallel>], iteration_bounds = array<i64: 2>, scalar_prefetch = 0 : i64, scratch_operands = 0 : i64, tpu.core_type = #tpu.core_type<tc>, window_params = [{pipeline_mode = #tpu.pipeline_mode<synchronous>, transform_indices = @transform_0, window_bounds = array<i64: 4, 128>}, {pipeline_mode = #tpu.pipeline_mode<synchronous>, transform_indices = @transform_1, window_bounds = array<i64: 4, 128>}, {transform_indices = @transform_2, window_bounds = array<i64: 32, 128>}, {transform_indices = @transform_3, window_bounds = array<i64: 32, 128>}, {transform_indices = @transform_4, window_bounds = array<i64: 32, 128>}, {transform_indices = @transform_5, window_bounds = array<i64: 32, 128>}, {transform_indices = @transform_6, window_bounds = array<i64: 32, 128>}, {transform_indices = @transform_7, window_bounds = array<i64: 32, 128>}, {transform_indices = @transform_8, window_bounds = array<i64: 32, 128>}, {transform_indices = @transform_9, window_bounds = array<i64: 32, 128>}]} {
    %c0 = arith.constant 0 : index
    %c0_0 = arith.constant 0 : index
    %0 = vector.load %arg1[%c0, %c0_0] : memref<4x128xf32, #tpu.memory_space<vmem>>, vector<4x128xf32>
    %c0_1 = arith.constant 0 : index
    %c0_2 = arith.constant 0 : index
    %1 = vector.load %arg2[%c0_1, %c0_2] : memref<4x128xf32, #tpu.memory_space<vmem>>, vector<4x128xf32>
    %c0_3 = arith.constant 0 : index
    %c0_4 = arith.constant 0 : index
    %2 = vector.load %arg3[%c0_3, %c0_4] : memref<32x128xf32, #tpu.memory_space<vmem>>, vector<32x128xf32>
    %cst = arith.constant dense<0.000000e+00> : vector<32xf32>
    %3 = vector.multi_reduction <add>, %2, %cst [1] : vector<32x128xf32> to vector<32xf32>
    %4 = vector.shape_cast %3 : vector<32xf32> to vector<32x1xf32>
    %5 = arith.mulf %2, %2 : vector<32x128xf32>
    %cst_5 = arith.constant dense<0.000000e+00> : vector<32xf32>
    %6 = vector.multi_reduction <add>, %5, %cst_5 [1] : vector<32x128xf32> to vector<32xf32>
    %7 = vector.shape_cast %6 : vector<32xf32> to vector<32x1xf32>
    %cst_6 = arith.constant 7.812500e-03 : f32
    %8 = vector.broadcast %cst_6 : f32 to vector<32x1xf32>
    %9 = arith.mulf %4, %8 : vector<32x1xf32>
    %cst_7 = arith.constant 7.812500e-03 : f32
    %10 = vector.broadcast %cst_7 : f32 to vector<32x1xf32>
    %11 = arith.mulf %7, %10 : vector<32x1xf32>
    %12 = arith.mulf %9, %9 : vector<32x1xf32>
    %13 = arith.subf %11, %12 : vector<32x1xf32>
    %cst_8 = arith.constant 0.000000e+00 : f32
    %14 = vector.broadcast %cst_8 : f32 to vector<32x1xf32>
    %15 = arith.maximumf %13, %14 : vector<32x1xf32>
    %cst_9 = arith.constant 9.99999974E-6 : f32
    %16 = vector.broadcast %cst_9 : f32 to vector<32x1xf32>
    %17 = arith.addf %15, %16 : vector<32x1xf32>
    %18 = math.rsqrt %17 : vector<32x1xf32>
    %19 = vector.extract_strided_slice %0 {offsets = [0, 0], sizes = [1, 128], strides = [1, 1]} : vector<4x128xf32> to vector<1x128xf32>
    %20 = vector.shape_cast %19 : vector<1x128xf32> to vector<128xf32>
    %21 = vector.shape_cast %20 : vector<128xf32> to vector<1x128xf32>
    %22 = vector.broadcast %9 : vector<32x1xf32> to vector<32x128xf32>
    %23 = arith.subf %2, %22 : vector<32x128xf32>
    %24 = vector.broadcast %18 : vector<32x1xf32> to vector<32x128xf32>
    %25 = arith.mulf %23, %24 : vector<32x128xf32>
    %26 = vector.broadcast %21 : vector<1x128xf32> to vector<32x128xf32>
    %27 = arith.mulf %25, %26 : vector<32x128xf32>
    %28 = vector.extract_strided_slice %1 {offsets = [0, 0], sizes = [1, 128], strides = [1, 1]} : vector<4x128xf32> to vector<1x128xf32>
    %29 = vector.shape_cast %28 : vector<1x128xf32> to vector<128xf32>
    %30 = vector.shape_cast %29 : vector<128xf32> to vector<1x128xf32>
    %31 = vector.broadcast %30 : vector<1x128xf32> to vector<32x128xf32>
    %32 = arith.addf %27, %31 : vector<32x128xf32>
    %c0_10 = arith.constant 0 : index
    %c0_11 = arith.constant 0 : index
    %33 = vector.load %arg7[%c0_10, %c0_11] : memref<32x128xf32, #tpu.memory_space<vmem>>, vector<32x128xf32>
    tpu.vector_store %arg7[%c0_10, %c0_11], %32 {strides = array<i32>} : memref<32x128xf32, #tpu.memory_space<vmem>>, vector<32x128xf32>,
    %c0_12 = arith.constant 0 : index
    %c0_13 = arith.constant 0 : index
    %34 = vector.load %arg4[%c0_12, %c0_13] : memref<32x128xf32, #tpu.memory_space<vmem>>, vector<32x128xf32>
    %cst_14 = arith.constant dense<0.000000e+00> : vector<32xf32>
    %35 = vector.multi_reduction <add>, %34, %cst_14 [1] : vector<32x128xf32> to vector<32xf32>
    %36 = vector.shape_cast %35 : vector<32xf32> to vector<32x1xf32>
    %37 = arith.mulf %34, %34 : vector<32x128xf32>
    %cst_15 = arith.constant dense<0.000000e+00> : vector<32xf32>
    %38 = vector.multi_reduction <add>, %37, %cst_15 [1] : vector<32x128xf32> to vector<32xf32>
    %39 = vector.shape_cast %38 : vector<32xf32> to vector<32x1xf32>
    %cst_16 = arith.constant 7.812500e-03 : f32
    %40 = vector.broadcast %cst_16 : f32 to vector<32x1xf32>
    %41 = arith.mulf %36, %40 : vector<32x1xf32>
    %cst_17 = arith.constant 7.812500e-03 : f32
    %42 = vector.broadcast %cst_17 : f32 to vector<32x1xf32>
    %43 = arith.mulf %39, %42 : vector<32x1xf32>
    %44 = arith.mulf %41, %41 : vector<32x1xf32>
    %45 = arith.subf %43, %44 : vector<32x1xf32>
    %cst_18 = arith.constant 0.000000e+00 : f32
    %46 = vector.broadcast %cst_18 : f32 to vector<32x1xf32>
    %47 = arith.maximumf %45, %46 : vector<32x1xf32>
    %cst_19 = arith.constant 9.99999974E-6 : f32
    %48 = vector.broadcast %cst_19 : f32 to vector<32x1xf32>
    %49 = arith.addf %47, %48 : vector<32x1xf32>
    %50 = math.rsqrt %49 : vector<32x1xf32>
    %51 = vector.extract_strided_slice %0 {offsets = [1, 0], sizes = [1, 128], strides = [1, 1]} : vector<4x128xf32> to vector<1x128xf32>
    %52 = vector.shape_cast %51 : vector<1x128xf32> to vector<128xf32>
    %53 = vector.shape_cast %52 : vector<128xf32> to vector<1x128xf32>
    %54 = vector.broadcast %41 : vector<32x1xf32> to vector<32x128xf32>
    %55 = arith.subf %34, %54 : vector<32x128xf32>
    %56 = vector.broadcast %50 : vector<32x1xf32> to vector<32x128xf32>
    %57 = arith.mulf %55, %56 : vector<32x128xf32>
    %58 = vector.broadcast %53 : vector<1x128xf32> to vector<32x128xf32>
    %59 = arith.mulf %57, %58 : vector<32x128xf32>
    %c0_20 = arith.constant 0 : index
    %c0_21 = arith.constant 0 : index
    %60 = vector.load %arg8[%c0_20, %c0_21] : memref<32x128xf32, #tpu.memory_space<vmem>>, vector<32x128xf32>
    tpu.vector_store %arg8[%c0_20, %c0_21], %59 {strides = array<i32>} : memref<32x128xf32, #tpu.memory_space<vmem>>, vector<32x128xf32>,
    %c0_22 = arith.constant 0 : index
    %c0_23 = arith.constant 0 : index
    %61 = vector.load %arg5[%c0_22, %c0_23] : memref<32x128xf32, #tpu.memory_space<vmem>>, vector<32x128xf32>
    %cst_24 = arith.constant dense<0.000000e+00> : vector<32xf32>
    %62 = vector.multi_reduction <add>, %61, %cst_24 [1] : vector<32x128xf32> to vector<32xf32>
    %63 = vector.shape_cast %62 : vector<32xf32> to vector<32x1xf32>
    %64 = arith.mulf %61, %61 : vector<32x128xf32>
    %cst_25 = arith.constant dense<0.000000e+00> : vector<32xf32>
    %65 = vector.multi_reduction <add>, %64, %cst_25 [1] : vector<32x128xf32> to vector<32xf32>
    %66 = vector.shape_cast %65 : vector<32xf32> to vector<32x1xf32>
    %cst_26 = arith.constant 7.812500e-03 : f32
    %67 = vector.broadcast %cst_26 : f32 to vector<32x1xf32>
    %68 = arith.mulf %63, %67 : vector<32x1xf32>
    %cst_27 = arith.constant 7.812500e-03 : f32
    %69 = vector.broadcast %cst_27 : f32 to vector<32x1xf32>
    %70 = arith.mulf %66, %69 : vector<32x1xf32>
    %71 = arith.mulf %68, %68 : vector<32x1xf32>
    %72 = arith.subf %70, %71 : vector<32x1xf32>
    %cst_28 = arith.constant 0.000000e+00 : f32
    %73 = vector.broadcast %cst_28 : f32 to vector<32x1xf32>
    %74 = arith.maximumf %72, %73 : vector<32x1xf32>
    %cst_29 = arith.constant 9.99999974E-6 : f32
    %75 = vector.broadcast %cst_29 : f32 to vector<32x1xf32>
    %76 = arith.addf %74, %75 : vector<32x1xf32>
    %77 = math.rsqrt %76 : vector<32x1xf32>
    %78 = vector.extract_strided_slice %0 {offsets = [2, 0], sizes = [1, 128], strides = [1, 1]} : vector<4x128xf32> to vector<1x128xf32>
    %79 = vector.shape_cast %78 : vector<1x128xf32> to vector<128xf32>
    %80 = vector.shape_cast %79 : vector<128xf32> to vector<1x128xf32>
    %81 = vector.broadcast %68 : vector<32x1xf32> to vector<32x128xf32>
    %82 = arith.subf %61, %81 : vector<32x128xf32>
    %83 = vector.broadcast %77 : vector<32x1xf32> to vector<32x128xf32>
    %84 = arith.mulf %82, %83 : vector<32x128xf32>
    %85 = vector.broadcast %80 : vector<1x128xf32> to vector<32x128xf32>
    %86 = arith.mulf %84, %85 : vector<32x128xf32>
    %c0_30 = arith.constant 0 : index
    %c0_31 = arith.constant 0 : index
    %87 = vector.load %arg9[%c0_30, %c0_31] : memref<32x128xf32, #tpu.memory_space<vmem>>, vector<32x128xf32>
    tpu.vector_store %arg9[%c0_30, %c0_31], %86 {strides = array<i32>} : memref<32x128xf32, #tpu.memory_space<vmem>>, vector<32x128xf32>,
    %c0_32 = arith.constant 0 : index
    %c0_33 = arith.constant 0 : index
    %88 = vector.load %arg6[%c0_32, %c0_33] : memref<32x128xf32, #tpu.memory_space<vmem>>, vector<32x128xf32>
    %cst_34 = arith.constant dense<0.000000e+00> : vector<32xf32>
    %89 = vector.multi_reduction <add>, %88, %cst_34 [1] : vector<32x128xf32> to vector<32xf32>
    %90 = vector.shape_cast %89 : vector<32xf32> to vector<32x1xf32>
    %91 = arith.mulf %88, %88 : vector<32x128xf32>
    %cst_35 = arith.constant dense<0.000000e+00> : vector<32xf32>
    %92 = vector.multi_reduction <add>, %91, %cst_35 [1] : vector<32x128xf32> to vector<32xf32>
    %93 = vector.shape_cast %92 : vector<32xf32> to vector<32x1xf32>
    %cst_36 = arith.constant 7.812500e-03 : f32
    %94 = vector.broadcast %cst_36 : f32 to vector<32x1xf32>
    %95 = arith.mulf %90, %94 : vector<32x1xf32>
    %cst_37 = arith.constant 7.812500e-03 : f32
    %96 = vector.broadcast %cst_37 : f32 to vector<32x1xf32>
    %97 = arith.mulf %93, %96 : vector<32x1xf32>
    %98 = arith.mulf %95, %95 : vector<32x1xf32>
    %99 = arith.subf %97, %98 : vector<32x1xf32>
    %cst_38 = arith.constant 0.000000e+00 : f32
    %100 = vector.broadcast %cst_38 : f32 to vector<32x1xf32>
    %101 = arith.maximumf %99, %100 : vector<32x1xf32>
    %cst_39 = arith.constant 9.99999974E-6 : f32
    %102 = vector.broadcast %cst_39 : f32 to vector<32x1xf32>
    %103 = arith.addf %101, %102 : vector<32x1xf32>
    %104 = math.rsqrt %103 : vector<32x1xf32>
    %105 = vector.extract_strided_slice %0 {offsets = [3, 0], sizes = [1, 128], strides = [1, 1]} : vector<4x128xf32> to vector<1x128xf32>
    %106 = vector.shape_cast %105 : vector<1x128xf32> to vector<128xf32>
    %107 = vector.shape_cast %106 : vector<128xf32> to vector<1x128xf32>
    %108 = vector.broadcast %95 : vector<32x1xf32> to vector<32x128xf32>
    %109 = arith.subf %88, %108 : vector<32x128xf32>
    %110 = vector.broadcast %104 : vector<32x1xf32> to vector<32x128xf32>
    %111 = arith.mulf %109, %110 : vector<32x128xf32>
    %112 = vector.broadcast %107 : vector<1x128xf32> to vector<32x128xf32>
    %113 = arith.mulf %111, %112 : vector<32x128xf32>
    %114 = vector.extract_strided_slice %1 {offsets = [3, 0], sizes = [1, 128], strides = [1, 1]} : vector<4x128xf32> to vector<1x128xf32>
    %115 = vector.shape_cast %114 : vector<1x128xf32> to vector<128xf32>
    %116 = vector.shape_cast %115 : vector<128xf32> to vector<1x128xf32>
    %117 = vector.broadcast %116 : vector<1x128xf32> to vector<32x128xf32>
    %118 = arith.addf %113, %117 : vector<32x128xf32>
    %c0_40 = arith.constant 0 : index
    %c0_41 = arith.constant 0 : index
    %119 = vector.load %arg10[%c0_40, %c0_41] : memref<32x128xf32, #tpu.memory_space<vmem>>, vector<32x128xf32>
    tpu.vector_store %arg10[%c0_40, %c0_41], %118 {strides = array<i32>} : memref<32x128xf32, #tpu.memory_space<vmem>>, vector<32x128xf32>,
    return
  }
  func.func @transform_0(%arg0: i32) -> (i32, i32) {
    %c0_i32 = arith.constant 0 : i32
    %c0_i32_0 = arith.constant 0 : i32
    %c0_i32_1 = arith.constant 0 : i32
    return %c0_i32, %c0_i32_0 : i32, i32
  }
  func.func @transform_1(%arg0: i32) -> (i32, i32) {
    %c0_i32 = arith.constant 0 : i32
    %c0_i32_0 = arith.constant 0 : i32
    %c0_i32_1 = arith.constant 0 : i32
    return %c0_i32, %c0_i32_0 : i32, i32
  }
  func.func @transform_2(%arg0: i32) -> (i32, i32) {
    %c0_i32 = arith.constant 0 : i32
    %c0_i32_0 = arith.constant 0 : i32
    return %arg0, %c0_i32 : i32, i32
  }
  func.func @transform_3(%arg0: i32) -> (i32, i32) {
    %c0_i32 = arith.constant 0 : i32
    %c0_i32_0 = arith.constant 0 : i32
    return %arg0, %c0_i32 : i32, i32
  }
  func.func @transform_4(%arg0: i32) -> (i32, i32) {
    %c0_i32 = arith.constant 0 : i32
    %c0_i32_0 = arith.constant 0 : i32
    return %arg0, %c0_i32 : i32, i32
  }
  func.func @transform_5(%arg0: i32) -> (i32, i32) {
    %c0_i32 = arith.constant 0 : i32
    %c0_i32_0 = arith.constant 0 : i32
    return %arg0, %c0_i32 : i32, i32
  }
  func.func @transform_6(%arg0: i32) -> (i32, i32) {
    %c0_i32 = arith.constant 0 : i32
    %c0_i32_0 = arith.constant 0 : i32
    return %arg0, %c0_i32 : i32, i32
  }
  func.func @transform_7(%arg0: i32) -> (i32, i32) {
    %c0_i32 = arith.constant 0 : i32
    %c0_i32_0 = arith.constant 0 : i32
    return %arg0, %c0_i32 : i32, i32
  }
  func.func @transform_8(%arg0: i32) -> (i32, i32) {
    %c0_i32 = arith.constant 0 : i32
    %c0_i32_0 = arith.constant 0 : i32
    return %arg0, %c0_i32 : i32, i32
  }
  func.func @transform_9(%arg0: i32) -> (i32, i32) {
    %c0_i32 = arith.constant 0 : i32
    %c0_i32_0 = arith.constant 0 : i32
    return %arg0, %c0_i32 : i32, i32
  }
}

</mosaic_0001>

<bundles_post_ra>
// kernel: tpu_custom_call.1
= control target key start
LH: loop header
LB: loop body
LE: loop exit
PB: predicated region body
PF: predicated region fallthrough
CT: control target
= control target key end

     0   :  { %s2372_s0 = inlined_call_operand.hbm [shape: f32[4,128], index: 0, kind: input, shape index: {}]   ;;  %s2373_s1 = inlined_call_operand.hbm [shape: f32[4,128], index: 1, kind: input, shape index: {}]   ;;  %s2374_s2 = inlined_call_operand.hbm [shape: f32[64,128], index: 2, kind: input, shape index: {}]   ;;  %s2375_s3 = inlined_call_operand.hbm [shape: f32[64,128], index: 3, kind: input, shape index: {}]   ;;  %s2376_s4 = inlined_call_operand.hbm [shape: f32[64,128], index: 4, kind: input, shape index: {}]   ;;  %s2377_s5 = inlined_call_operand.hbm [shape: f32[64,128], index: 5, kind: input, shape index: {}]   ;;  %s2378_s6 = inlined_call_operand.hbm [shape: f32[64,128], index: 6, kind: output, shape index: {0}]   ;;  %s2379_s7 = inlined_call_operand.hbm [shape: f32[64,128], index: 7, kind: output, shape index: {1}]   ;;  %s2380_s8 = inlined_call_operand.hbm [shape: f32[64,128], index: 8, kind: output, shape index: {2}]   ;;  %s2381_s9 = inlined_call_operand.hbm [shape: f32[64,128], index: 9, kind: output, shape index: {3}]  }
   0x1   :  { %2402 = sst [smem:[#allocation29_spill]] %s2372_s0 }
   0x2   :  { %2403 = sst [smem:[#allocation30_spill]] %s2374_s2 }
   0x3   :  { %2404 = sst [smem:[#allocation31_spill]] %s2375_s3 }
   0x4   :  { %2405 = sst [smem:[#allocation32_spill]] %s2380_s8 }
   0x5   :  { %15 = vsyncpa [#allocation3], 0 }
   0x6   :  { %16 = vsyncpa [#allocation6], 0 }
   0x7   :  { %17 = vsyncpa [#allocation4], 0 }
   0x8   :  { %19 = vsyncpa [#allocation4 + $0x1], 0 }
   0x9   :  { %20 = vsyncpa [#allocation13], 0 }
   0xa   :  { %22 = vsyncpa [#allocation13 + $0x1], 0 }
   0xb   :  { %23 = vsyncpa [#allocation16], 0 }
   0xc   :  { %25 = vsyncpa [#allocation16 + $0x1], 0  ;;  %s1720_s30 = smov 0   ;;  %s1722_s10 = smov 0  }
   0xd   :  { %s1724_s11 = smov 0   ;;  %s1726_s12 = smov 0  }
   0xe LB: > { %2406 = sst [smem:[#allocation23_spill]] %s1642_s30  ;;  %s1741_s13 = sadd.s32 4294967295, %s1654_s12   ;;  %s1654_s12 = sphi %s1726_s12, %s2443_s12   ;;  %s1650_s11 = sphi %s1724_s11, %s2445_s11   ;;  %s1646_s10 = sphi %s1722_s10, %s2447_s10   ;;  %s1642_s30 = sphi %s1720_s30, %s2446_s30  }
   0xf   : > { %2407 = sst [smem:[#allocation24_spill]] %s1650_s11  ;;  %s2384_s14 = sadd.s32 4294967294, %s1654_s12  }
  0x10   : > { %2408 = sst [smem:[#allocation25_spill]] %s1654_s12  ;;  %s1745_s15 = sadd.s32 1, %s1654_s12  }
  0x11   : > { %2409 = sst [smem:[#allocation26_spill]] %s1745_s15  ;;  %s80_s16 = sadd.s32 1, %s1650_s11 }
  0x12   : > { %s77_s17 = ssub.s32 %s1654_s12, %s1745_s15  ;;  %p87_p0 = scmp.ne.s32.totalorder %s1650_s11, %s1646_s10 }
  0x13   : > { %p78_p1 = scmp.eq.s32.totalorder %s77_s17, 0  ;;  %p88_p2 = scmp.eq.s32.totalorder %s1654_s12, 0 }
  0x14   : > { %p93_p3 = scmp.ne.s32.totalorder %s1646_s10, %s1642_s30  ;;  %p2382_p4 = scmp.eq.s32.totalorder %s1741_s13, 0 }
  0x15   : > { %s1757_s18 = scalar_select %p78_p1, %s1650_s11, %s80_s16  }
  0x16   : > { %p1759_p5 = por %p88_p2, %p87_p0  ;;  %p1765_p6 = por %p2382_p4, %p93_p3 }
  0x17   : > { %2410 = sst [smem:[#allocation27_spill]] %s1757_s18  ;;  %p195_p7 = scmp.eq.s32.totalorder %s1741_s13, 1 }
  0x18   : > { %s2412_s20 = scalar_select %p1765_p6, 1, 0 }
  0x19   : > { %p201_p8 = scmp.eq.s32.totalorder %s2384_s14, 1  ;;  %p1150_p9 = scmp.ge.s32.totalorder %s1654_s12, 1 }
  0x1a   : > { %p286_p10 = scmp.lt.s32.totalorder %s1654_s12, 3  ;;  %p1774_p11 = por %p195_p7, %p87_p0 }
  0x1b   : > { %p1778_p12 = por %p201_p8, %p93_p3  ;;  %s1656_s24 = smov [#allocation2]  }
  0x1c   : > { %s2413_s21 = scalar_select %p1774_p11, 1, 0 }
  0x1d   : > { %s2414_s22 = scalar_select %p1778_p12, 1, 0 }
  0x1e   : > { %p1782_p13 = pnand %p1150_p9, %p286_p10  ;;  %s299_s25 = sshll.u32 %s1656_s24, 4  ;;  %s300_s25 = int_to_ptr.vmem [resolvable:$true] %s299_s25 }
  0x1f   : > { %2415 = sst [smem:[#allocation28_spill]] %s2414_s22  ;;  %p1258_p4 = scmp.lt.s32.totalorder %s1654_s12, 2 }
  0x20   : > { %s2416_s23 = scalar_select %p1782_p13, 1, 0 }
  0x21   : > { %p1223_p2 = pneg %p1782_p13  ;;  %p2417_p0 = scmp.eq.s32.totalorder %s1741_s13, 0 }
  0x22   : > { %s321_s27 = sand.u32 1, %s1654_s12   ;;  %p1799_p3 = pnand %p1258_p4, %p1759_p5 }
  0x23   : > { %p1792_p7 = pnand %p1223_p2, %p2417_p0  ;;  %s323_s29 = sand.u32 1, %s1650_s11  }
  0x24   : > { %s1343_s16 = scalar_lea.vmem %s300_s25, 64  ;;  %p1351_p0 = scmp.lt.s32.totalorder %s300_s25, %s300_s25 }
  0x25   : > { %s2418_s26 = scalar_select %p1792_p7, 1, 0 }
  0x26   : > { %p2391_p8 = pneg %p1792_p7  ;;  %p1344_p9 = scmp.ne.s32.totalorder %s300_s25, %s1343_s16 }
  0x27   : > { %p1352_p1 = scmp.lt.s32.totalorder %s1343_s16, %s1343_s16 }
  0x28   : > { %p1346_p10 = pnand %p1344_p9, %p2391_p8 }
  0x29   : > { %p1353_p12 = por %p1352_p1, %p1351_p0 }
  0x2a   : > { %p1347_p2 = pneg %p1346_p10 }
  0x2c   : > { %p1354_p11 = pnand %p1353_p12, %p1347_p2 }
  0x2e   : > { %1357 = shalt.err (!%p1354_p11)
}
  0x2f   : > { %s2420_s0 = sld [smem:[#allocation29_spill]]  ;;  %s1814_s24 = sshll.u32 %s323_s29, 5 }
  0x30   : > { %s1817_s14 = sshll.u32 %s1654_s12, 9  ;;  %s2421_s2 = sld [smem:[#allocation30_spill]] }
  0x31   : > { %s325_s15 = scalar_lea.vmem [#allocation7], %s1814_s24  ;;  %s1828_s17 = scalar_lea.sflag [#allocation3], %s321_s27 }
  0x32   : > { %s332_s22 = sshll.u32 %s325_s15, 4  ;;  %p1834_p5 = pneg %p1799_p3  ;;  %s1826_s22 = int_to_ptr.vmem [resolvable:$true] %s332_s22 }
  0x35   : > { %1226 = dma.hbm_to_vmem [thread:$0]  (!%p1792_p7), %s2420_s0, 64, %s300_s25, [#allocation3]  }
  0x36   : > { %s1823_s16 = scalar_lea.hbm %s2421_s2, %s1817_s14  ;;  %s1363_s19 = scalar_lea.hbm %s2421_s2, 1024 }
  0x37   : > { %s1358_s25 = scalar_lea.hbm %s1823_s16, 512  ;;  %p1364_p1 = scmp.lt.s32.totalorder %s1823_s16, %s2421_s2 }
  0x38   : > { %p1359_p4 = scmp.ne.s32.totalorder %s1823_s16, %s1358_s25  ;;  %p1365_p9 = scmp.lt.s32.totalorder %s1363_s19, %s1358_s25 }
  0x3a   : > { %p1361_p11 = pnand %p1834_p5, %p1359_p4  ;;  %p1366_p10 = por %p1365_p9, %p1364_p1 }
  0x3c   : > { %p1362_p12 = pneg %p1361_p11 }
  0x3e   : > { %p1367_p2 = pnand %p1366_p10, %p1362_p12 }
  0x40   : > { %1370 = shalt.err (!%p1367_p2)
}
  0x41   : > { %s1371_s27 = scalar_lea.vmem %s1826_s22, 512  ;;  %s1657_s12 = smov [#allocation7]  }
  0x42   : > { %p1372_p0 = scmp.ne.s32.totalorder %s1826_s22, %s1371_s27  ;;  %s1376_s11 = sshll.u32 %s1657_s12, 4  ;;  %s1377_s11 = int_to_ptr.vmem [resolvable:$false] %s1376_s11 }
  0x43   : > { %s1378_s18 = scalar_lea.vmem %s1377_s11, 1024  ;;  %p1379_p8 = scmp.lt.s32.totalorder %s1826_s22, %s1377_s11 }
  0x44   : > { %p1374_p4 = pnand %p1372_p0, %p1834_p5  ;;  %p1380_p6 = scmp.lt.s32.totalorder %s1378_s18, %s1371_s27 }
  0x46   : > { %p1375_p11 = pneg %p1374_p4  ;;  %p1381_p13 = por %p1380_p6, %p1379_p8 }
  0x48   : > { %p1382_p7 = pnand %p1381_p13, %p1375_p11 }
  0x4a   : > { %1385 = shalt.err (!%p1382_p7)
}
  0x4b   : > { %s2397_s0 = smov 128   ;;  %s2399_s25 = smov 8  }
  0x4c   : > { %1233 = dma.hbm_to_vmem [thread:$0]  (!%p1799_p3), %s1823_s16, 512, %s1826_s22, %s1828_s17, %s2397_s0, %s2397_s0, %s2399_s25  }
  0x4d   : > { %s2423_s3 = sld [smem:[#allocation31_spill]]  ;;  %s346_s27 = scalar_lea.vmem [#allocation8], %s1814_s24 }
  0x4e   : > { %s353_s11 = sshll.u32 %s346_s27, 4  ;;  %s354_s11 = int_to_ptr.vmem [resolvable:$true] %s353_s11 }
  0x53   : > { %s1864_s15 = scalar_lea.hbm %s2423_s3, %s1817_s14  ;;  %s1391_s22 = scalar_lea.hbm %s2423_s3, 1024 }
  0x54   : > { %s1386_s18 = scalar_lea.hbm %s1864_s15, 512  ;;  %p1392_p8 = scmp.lt.s32.totalorder %s1864_s15, %s2423_s3 }
  0x55   : > { %p1387_p6 = scmp.ne.s32.totalorder %s1864_s15, %s1386_s18  ;;  %p1393_p12 = scmp.lt.s32.totalorder %s1391_s22, %s1386_s18 }
  0x57   : > { %p1389_p13 = pnand %p1387_p6, %p1834_p5  ;;  %p1394_p1 = por %p1393_p12, %p1392_p8 }
  0x59   : > { %p1390_p7 = pneg %p1389_p13 }
  0x5b   : > { %p1395_p9 = pnand %p1394_p1, %p1390_p7 }
  0x5d   : > { %1398 = shalt.err (!%p1395_p9)
}
  0x5e   : > { %s1399_s12 = scalar_lea.vmem %s354_s11, 512  ;;  %s1660_s19 = smov [#allocation8]  }
  0x5f   : > { %p1400_p10 = scmp.ne.s32.totalorder %s354_s11, %s1399_s12  ;;  %s1404_s27 = sshll.u32 %s1660_s19, 4  ;;  %s1405_s27 = int_to_ptr.vmem [resolvable:$false] %s1404_s27 }
  0x60   : > { %s1406_s25 = scalar_lea.vmem %s1405_s27, 1024  ;;  %p1407_p4 = scmp.lt.s32.totalorder %s354_s11, %s1405_s27 }
  0x61   : > { %p1402_p2 = pnand %p1400_p10, %p1834_p5  ;;  %p1408_p11 = scmp.lt.s32.totalorder %s1406_s25, %s1399_s12 }
  0x63   : > { %p1403_p0 = pneg %p1402_p2  ;;  %p1409_p6 = por %p1408_p11, %p1407_p4 }
  0x65   : > { %p1410_p13 = pnand %p1409_p6, %p1403_p0 }
  0x67   : > { %1413 = shalt.err (!%p1410_p13)
}
  0x68   : > { %s2424_s2 = smov 8   ;;  %s2425_s30 = smov 128  }
  0x69   : > { %1236 = dma.hbm_to_vmem [thread:$0]  (!%p1799_p3), %s1864_s15, 512, %s354_s11, %s1828_s17, %s2425_s30, %s2425_s30, %s2424_s2  }
  0x6a   : > { %s1891_s22 = scalar_lea.hbm %s2376_s4, %s1817_s14  ;;  %s367_s25 = scalar_lea.vmem [#allocation9], %s1814_s24 }
  0x6b   : > { %s374_s16 = sshll.u32 %s367_s25, 4  ;;  %s1414_s12 = scalar_lea.hbm %s1891_s22, 512  ;;  %s375_s16 = int_to_ptr.vmem [resolvable:$true] %s374_s16 }
  0x6c   : > { %p1415_p7 = scmp.ne.s32.totalorder %s1891_s22, %s1414_s12  ;;  %s1419_s15 = scalar_lea.hbm %s2376_s4, 1024 }
  0x6d   : > { %p1420_p1 = scmp.lt.s32.totalorder %s1891_s22, %s2376_s4  ;;  %p1421_p9 = scmp.lt.s32.totalorder %s1419_s15, %s1414_s12 }
  0x6e   : > { %p1417_p8 = pnand %p1415_p7, %p1834_p5 }
  0x6f   : > { %p1422_p10 = por %p1421_p9, %p1420_p1 }
  0x70   : > { %p1418_p12 = pneg %p1417_p8 }
  0x72   : > { %p1423_p2 = pnand %p1422_p10, %p1418_p12 }
  0x74   : > { %1426 = shalt.err (!%p1423_p2)
}
  0x75   : > { %s1427_s0 = scalar_lea.vmem %s375_s16, 512  ;;  %s1661_s18 = smov [#allocation9]  }
  0x76   : > { %p1428_p0 = scmp.ne.s32.totalorder %s375_s16, %s1427_s0  ;;  %s1432_s25 = sshll.u32 %s1661_s18, 4  ;;  %s1433_s25 = int_to_ptr.vmem [resolvable:$false] %s1432_s25 }
  0x77   : > { %s1434_s8 = scalar_lea.vmem %s1433_s25, 1024  ;;  %p1435_p6 = scmp.lt.s32.totalorder %s375_s16, %s1433_s25 }
  0x78   : > { %p1430_p4 = pnand %p1428_p0, %p1834_p5  ;;  %p1436_p13 = scmp.lt.s32.totalorder %s1434_s8, %s1427_s0 }
  0x7a   : > { %p1431_p11 = pneg %p1430_p4  ;;  %p1437_p7 = por %p1436_p13, %p1435_p6 }
  0x7c   : > { %p1438_p8 = pnand %p1437_p7, %p1431_p11 }
  0x7e   : > { %1441 = shalt.err (!%p1438_p8)
}
  0x7f   : > { %1239 = dma.hbm_to_vmem [thread:$0]  (!%p1799_p3), %s1891_s22, 512, %s375_s16, %s1828_s17, %s2425_s30, %s2425_s30, %s2424_s2  }
  0x80   : > { %s1662_s3 = smov [#allocation5]   ;;  %s1918_s8 = scalar_lea.hbm %s2377_s5, %s1817_s14 }
  0x81   : > { %s310_s12 = sshll.u32 %s1662_s3, 4  ;;  %p2426_p1 = scmp.ne.s32.totalorder %s2418_s26, 0  ;;  %s311_s12 = int_to_ptr.vmem [resolvable:$true] %s310_s12 }
  0x82   : > { %s1453_s15 = scalar_lea.vmem %s311_s12, 64  ;;  %p1461_p0 = scmp.lt.s32.totalorder %s311_s12, %s311_s12 }
  0x83   : > { %p1454_p12 = scmp.ne.s32.totalorder %s311_s12, %s1453_s15  ;;  %p2427_p9 = pneg %p2426_p1 }
  0x84   : > { %p1462_p4 = scmp.lt.s32.totalorder %s1453_s15, %s1453_s15 }
  0x85   : > { %p1456_p10 = pnand %p1454_p12, %p2427_p9 }
  0x86   : > { %p1463_p11 = por %p1462_p4, %p1461_p0 }
  0x87   : > { %p1457_p2 = pneg %p1456_p10 }
  0x89   : > { %p1464_p6 = pnand %p1463_p11, %p1457_p2 }
  0x8b   : > { %1467 = shalt.err (!%p1464_p6)
}
  0x8c   : > { %1229 = dma.hbm_to_vmem [thread:$0]  (!%p2426_p1), %s2373_s1, 64, %s311_s12, [#allocation6]  }
  0x8d   : > { %s388_s14 = scalar_lea.vmem [#allocation10], %s1814_s24  ;;  %s1468_s0 = scalar_lea.hbm %s1918_s8, 512 }
  0x8e   : > { %s395_s11 = sshll.u32 %s388_s14, 4  ;;  %p1469_p13 = scmp.ne.s32.totalorder %s1918_s8, %s1468_s0  ;;  %s396_s11 = int_to_ptr.vmem [resolvable:$true] %s395_s11 }
  0x8f   : > { %s1473_s26 = scalar_lea.hbm %s2377_s5, 1024  ;;  %p1474_p12 = scmp.lt.s32.totalorder %s1918_s8, %s2377_s5 }
  0x90   : > { %p1471_p7 = pnand %p1469_p13, %p1834_p5  ;;  %p1475_p9 = scmp.lt.s32.totalorder %s1473_s26, %s1468_s0 }
  0x92   : > { %p1472_p8 = pneg %p1471_p7  ;;  %p1476_p10 = por %p1475_p9, %p1474_p12 }
  0x94   : > { %p1477_p2 = pnand %p1476_p10, %p1472_p8 }
  0x96   : > { %1480 = shalt.err (!%p1477_p2)
}
  0x97   : > { %s1481_s24 = scalar_lea.vmem %s396_s11, 512  ;;  %s1663_s12 = smov [#allocation10]  }
  0x98   : > { %p1482_p1 = scmp.ne.s32.totalorder %s396_s11, %s1481_s24  ;;  %s1486_s27 = sshll.u32 %s1663_s12, 4  ;;  %s1487_s27 = int_to_ptr.vmem [resolvable:$false] %s1486_s27 }
  0x99   : > { %s1488_s15 = scalar_lea.vmem %s1487_s27, 1024  ;;  %p1489_p11 = scmp.lt.s32.totalorder %s396_s11, %s1487_s27 }
  0x9a   : > { %p1484_p0 = pnand %p1482_p1, %p1834_p5  ;;  %p1490_p6 = scmp.lt.s32.totalorder %s1488_s15, %s1481_s24 }
  0x9c   : > { %p1485_p4 = pneg %p1484_p0  ;;  %p1491_p13 = por %p1490_p6, %p1489_p11 }
  0x9e   : > { %p1492_p7 = pnand %p1491_p13, %p1485_p4 }
  0xa0   : > { %1495 = shalt.err (!%p1492_p7)
}
  0xa1   : > { %1242 = dma.hbm_to_vmem [thread:$0]  (!%p1799_p3), %s1918_s8, 512, %s396_s11, %s1828_s17, %s2425_s30, %s2425_s30, %s2424_s2  }
  0xa2   : > { %p2428_p5 = scmp.ne.s32.totalorder %s2416_s23, 0 }
  0xa3   : > { %p2429_p8 = scmp.eq.s32.totalorder (!%p2428_p5), %s1741_s13, 0 }
  0xa4   : > { %407 = sbr.rel (%p2428_p5) target bundleno = 460 (0x1cc), region = 44 }
  0xa9   : > { %1617 = dma.done.wait (%p2429_p8), [#allocation3], 64   ;;  %p2430_p12 = pmov %p2429_p8 }
  0xaa   : > { %p2431_p9 = pmov %p2429_p8 }
  0xab   : > { %1619 = vsyncadd (%p2430_p12), [#allocation3], 4294967232 }
  0xac   : > { %1621 = dma.done.wait (%p2431_p9), [#allocation6], 64   ;;  %p2432_p10 = pmov %p2429_p8 }
  0xad   : > { %s417_s28 = sand.u32 1, %s1741_s13   ;;  %s1961_s17 = sand.u32 1, %s1646_s10  }
  0xae   : > { %1623 = vsyncadd (%p2432_p10), [#allocation6], 4294967232  ;;  %s1964_s23 = sshll.u32 %s1961_s17, 5  ;;  %s418_s29 = scalar_lea.sflag [#allocation3], %s417_s28 }
  0xaf   : > { %s421_s2 = scalar_lea.vmem [#allocation7], %s1964_s23  ;;  %p2433_p3 = scmp.ne.s32.totalorder %s2412_s20, 0 }
  0xb1   : > { %1625 = dma.done.wait (%p2433_p3), %s418_s29, 2048  }
  0xb2   : > { %1627 = vsyncadd (%p2433_p3), %s418_s29, 4294965248  ;;  %v1973_v0 = vld [vmem:[%s421_s2 + $0x10] sm:$0xff]  ;;  %v1975_v1 = vld [vmem:[%s421_s2] sm:$0xff]  ;;  %s448_s20 = scalar_lea.vmem [#allocation10], %s1964_s23  ;;  %s430_s30 = scalar_lea.vmem [#allocation8], %s1964_s23  ;;  %v583_v54 = vlaneseq }
  0xb3   : > { %531 = vadd.xlane.f32.xlu1 %v1973_v0  ;;  %527 = vadd.xlane.f32.xlu0 %v1975_v1  ;;  %v1979_v2 = vld [vmem:[%s421_s2 + $0x18] sm:$0xff]  ;;  %v1981_v3 = vld [vmem:[%s421_s2 + $0x8] sm:$0xff]  ;;  %v1988_v5 = vld [vmem:[%s448_s20] sm:$0xff]  ;;  %v535_v13 = vmul.f32 %v1975_v1, %v1975_v1  ;;  %v537_v15 = vmul.f32 %v1973_v0, %v1973_v0  ;;  %s439_s8 = scalar_lea.vmem [#allocation9], %s1964_s23  ;;  %s2146_s22 = sshll.u32 %s1741_s13, 9 }
  0xb4   : > { %v1986_v4 = vld [vmem:[%s448_s20 + $0x8] sm:$0xff]  ;;  %v1992_v6 = vld [vmem:[%s448_s20 + $0x18] sm:$0xff]  ;;  %v1994_v7 = vld [vmem:[%s448_s20 + $0x10] sm:$0xff]  ;;  %v536_v12 = vmul.f32 %v1981_v3, %v1981_v3  ;;  %v538_v14 = vmul.f32 %v1979_v2, %v1979_v2  ;;  %v759_v21 = vmul.f32 %v1988_v5, %v1988_v5  ;;  %s491_s16 = scalar_lea.vmem [#allocation11], %s1964_s23  ;;  %s2162_s18 = scalar_lea.hbm %s2378_s6, %s2146_s22 }
  0xb5   : > { %v1999_v8 = vld [vmem:[%s430_s30 + $0x8] sm:$0xff]  ;;  %v2001_v9 = vld [vmem:[%s430_s30] sm:$0xff]  ;;  %v2005_v10 = vld [vmem:[%s430_s30 + $0x18] sm:$0xff]  ;;  %v760_v20 = vmul.f32 %v1986_v4, %v1986_v4  ;;  %v762_v22 = vmul.f32 %v1992_v6, %v1992_v6  ;;  %v761_v23 = vmul.f32 %v1994_v7, %v1994_v7  ;;  %s856_s14 = sshll.u32 %s491_s16, 4  ;;  %s828_s25 = scalar_lea.sflag [#allocation4], %s1961_s17  ;;  %s2164_s14 = int_to_ptr.vmem [resolvable:$true] %s856_s14 }
  0xb6   : > { %v2007_v11 = vld [vmem:[%s430_s30 + $0x10] sm:$0xff]  ;;  %v2020_v16 = vld [vmem:[%s439_s8 + $0x8] sm:$0xff]  ;;  %v2022_v17 = vld [vmem:[%s439_s8] sm:$0xff]  ;;  %v616_v24 = vmul.f32 %v1999_v8, %v1999_v8  ;;  %v615_v25 = vmul.f32 %v2001_v9, %v2001_v9  ;;  %v618_v26 = vmul.f32 %v2005_v10, %v2005_v10  ;;  %s1496_s26 = scalar_lea.vmem %s2164_s14, 512  ;;  %p2434_p1 = scmp.ne.s32.totalorder %s2413_s21, 0 }
  0xb7   : > { %533 = vadd.xlane.f32.xlu1 %v1979_v2  ;;  %529 = vadd.xlane.f32.xlu0 %v1981_v3  ;;  %v2026_v18 = vld [vmem:[%s439_s8 + $0x18] sm:$0xff]  ;;  %v2028_v19 = vld [vmem:[%s439_s8 + $0x10] sm:$0xff]  ;;  %v617_v27 = vmul.f32 %v2007_v11, %v2007_v11  ;;  %v688_v28 = vmul.f32 %v2020_v16, %v2020_v16  ;;  %v687_v29 = vmul.f32 %v2022_v17, %v2022_v17  ;;  %p1497_p2 = scmp.ne.s32.totalorder %s2164_s14, %s1496_s26  ;;  %s1664_s3 = smov [#allocation11]  }
  0xb8   : > { %v690_v30 = vmul.f32 %v2026_v18, %v2026_v18  ;;  %v689_v31 = vmul.f32 %v2028_v19, %v2028_v19  ;;  %s1500_s19 = sshll.u32 %s1664_s3, 4  ;;  %s1501_s19 = int_to_ptr.vmem [resolvable:$false] %s1500_s19 }
  0xb9   : > { %p1498_p0 = pnand %p1497_p2, %p2434_p1  ;;  %s1502_s24 = scalar_lea.vmem %s1501_s19, 1024 }
  0xba   : > { %p1503_p11 = scmp.lt.s32.totalorder %s2164_s14, %s1501_s19  ;;  %p1504_p6 = scmp.lt.s32.totalorder %s1502_s24, %s1496_s26 }
  0xbb   : > { %753 = vadd.xlane.f32.xlu1 %v1986_v4  ;;  %751 = vadd.xlane.f32.xlu0 %v1988_v5  ;;  %p1499_p4 = pneg %p1498_p0 }
  0xbc   : > { %p1505_p13 = por %p1504_p6, %p1503_p11 }
  0xbe   : > { %p1506_p7 = pnand %p1505_p13, %p1499_p4 }
  0xbf   : > { %757 = vadd.xlane.f32.xlu1 %v1992_v6  ;;  %755 = vadd.xlane.f32.xlu0 %v1994_v7 }
  0xc3   : > { %609 = vadd.xlane.f32.xlu1 %v1999_v8  ;;  %607 = vadd.xlane.f32.xlu0 %v2001_v9 }
  0xc7   : > { %613 = vadd.xlane.f32.xlu1 %v2005_v10  ;;  %611 = vadd.xlane.f32.xlu0 %v2007_v11 }
  0xcb   : > { %541 = vadd.xlane.f32.xlu1 %v536_v12  ;;  %539 = vadd.xlane.f32.xlu0 %v535_v13  ;;  %v2072_v13 = vshrl.u32 %v583_v54, 7 }
  0xcf   : > { %545 = vadd.xlane.f32.xlu1 %v538_v14  ;;  %543 = vadd.xlane.f32.xlu0 %v537_v15 }
  0xd3   : > { %681 = vadd.xlane.f32.xlu1 %v2020_v16  ;;  %679 = vadd.xlane.f32.xlu0 %v2022_v17 }
  0xd7   : > { %685 = vadd.xlane.f32.xlu1 %v2026_v18  ;;  %683 = vadd.xlane.f32.xlu0 %v2028_v19 }
  0xdb   : > { %765 = vadd.xlane.f32.xlu1 %v760_v20  ;;  %763 = vadd.xlane.f32.xlu0 %v759_v21 }
  0xdf   : > { %769 = vadd.xlane.f32.xlu1 %v762_v22  ;;  %767 = vadd.xlane.f32.xlu0 %v761_v23 }
  0xe3   : > { %621 = vadd.xlane.f32.xlu1 %v616_v24  ;;  %619 = vadd.xlane.f32.xlu0 %v615_v25 }
  0xe7   : > { %625 = vadd.xlane.f32.xlu1 %v618_v26  ;;  %623 = vadd.xlane.f32.xlu0 %v617_v27  ;;  %v585_v26 = vsub.s32 0, %v2072_v13 }
  0xeb   : > { %693 = vadd.xlane.f32.xlu1 %v688_v28  ;;  %691 = vadd.xlane.f32.xlu0 %v687_v29  ;;  %v2075_v29 = vld [vmem:[#allocation2] sm:$0xf] }
  0xef   : > { %697 = vadd.xlane.f32.xlu1 %v690_v30  ;;  %695 = vadd.xlane.f32.xlu0 %v689_v31  ;;  %v2077_v30 = vld [vmem:[#allocation5] sm:$0xf] }
 0x13c   : > { %v532_v32 = vpop.xlane.xlu1 %531  ;;  %v528_v33 = vpop.xlane.xlu0 %527 }
 0x13d   : > { %v2056_v44 = vmul.f32 0.0078125, %v528_v33  ;;  %v2060_v46 = vmul.f32 0.0078125, %v532_v32 }
 0x13f   : > { %v555_v50 = vmul.f32 %v2056_v44, %v2056_v44  ;;  %v557_v57 = vmul.f32 %v2060_v46, %v2060_v46 }
 0x140   : > { %v534_v34 = vpop.xlane.xlu1 %533  ;;  %v530_v35 = vpop.xlane.xlu0 %529 }
 0x141   : > { %v2058_v45 = vmul.f32 0.0078125, %v530_v35  ;;  %v2062_v47 = vmul.f32 0.0078125, %v534_v34  ;;  %v2088_v35 = vrot.slane %v2075_v29, %v585_v26 }
 0x143   : > { %v556_v51 = vmul.f32 %v2058_v45, %v2058_v45  ;;  %v558_v58 = vmul.f32 %v2062_v47, %v2062_v47 }
 0x144   : > { %v754_v36 = vpop.xlane.xlu1 %753  ;;  %v752_v37 = vpop.xlane.xlu0 %751 }
 0x145   : > { %v2083_v33 = vmul.f32 0.0078125, %v754_v36  ;;  %v2085_v34 = vmul.f32 0.0078125, %v752_v37  ;;  %v809_v36 = vsub.s32 3, %v2072_v13 }
 0x147   : > { %v779_v54 = vmul.f32 %v2085_v34, %v2085_v34 }
 0x148   : > { %v758_v38 = vpop.xlane.xlu1 %757  ;;  %v756_v39 = vpop.xlane.xlu0 %755 }
 0x14c   : > { %v610_v40 = vpop.xlane.xlu1 %609  ;;  %v608_v41 = vpop.xlane.xlu0 %607 }
 0x150   : > { %v614_v42 = vpop.xlane.xlu1 %613  ;;  %v612_v43 = vpop.xlane.xlu0 %611 }
 0x154   : > { %v542_v48 = vpop.xlane.xlu1 %541  ;;  %v540_v49 = vpop.xlane.xlu0 %539 }
 0x155   : > { %v552_v52 = vmul.f32 0.0078125, %v542_v48  ;;  %v551_v53 = vmul.f32 0.0078125, %v540_v49  ;;  %v2091_v48 = vrot.slane %v2077_v30, %v585_v26  ;;  %v577_v49 = vsub.f32 %v1973_v0, %v2060_v46 }
 0x156   : > { %v2108_v0 = vmul.f32 0.0078125, %v614_v42  ;;  %v578_v46 = vsub.f32 %v1979_v2, %v2062_v47 }
 0x157   : > { %v560_v55 = vsub.f32 %v552_v52, %v556_v51  ;;  %v559_v56 = vsub.f32 %v551_v53, %v555_v50  ;;  %v2095_v50 = vmul.f32 0.0078125, %v758_v38  ;;  %v2097_v51 = vmul.f32 0.0078125, %v756_v39 }
 0x158   : > { %v546_v59 = vpop.xlane.xlu1 %545  ;;  %v544_v60 = vpop.xlane.xlu0 %543  ;;  %v780_v53 = vmul.f32 %v2083_v33, %v2083_v33  ;;  %v2110_v38 = vmul.f32 0.0078125, %v612_v43  ;;  %v575_v39 = vsub.f32 %v1975_v1, %v2056_v44 }
 0x159   : > { %v564_v61 = vmax.f32 %v560_v55, 0.0  ;;  %v563_v62 = vmax.f32 %v559_v56, 0.0  ;;  %v554_v63 = vmul.f32 0.0078125, %v546_v59  ;;  %v553_v12 = vmul.f32 0.0078125, %v544_v60 }
 0x15b   : > { %v568_v14 = vadd.f32 1e-05, %v564_v61  ;;  %v567_v15 = vadd.f32 1e-05, %v563_v62  ;;  %v562_v20 = vsub.f32 %v554_v63, %v558_v58  ;;  %v561_v21 = vsub.f32 %v553_v12, %v557_v57 }
 0x15c   : > { %v682_v22 = vpop.xlane.xlu1 %681  ;;  %v680_v23 = vpop.xlane.xlu0 %679  ;;  %v2104_v57 = vmul.f32 0.0078125, %v610_v40  ;;  %v2106_v58 = vmul.f32 0.0078125, %v608_v41  ;;  %v576_v61 = vsub.f32 %v1981_v3, %v2058_v45  ;;  %v782_v40 = vmul.f32 %v2095_v50, %v2095_v50 }
 0x15d   : > { %1300 = vrsqrt.f32 %v568_v14  ;;  %v566_v24 = vmax.f32 %v562_v20, 0.0  ;;  %v565_v25 = vmax.f32 %v561_v21, 0.0  ;;  %v781_v41 = vmul.f32 %v2097_v51, %v2097_v51 }
 0x15e   : > { %1302 = vrsqrt.f32 %v567_v15  ;;  %v2122_v42 = vmul.f32 0.0078125, %v682_v22  ;;  %v636_v47 = vmul.f32 %v2104_v57, %v2104_v57  ;;  %v635_v3 = vmul.f32 %v2106_v58, %v2106_v58 }
 0x15f   : > { %v570_v27 = vadd.f32 1e-05, %v566_v24  ;;  %v569_v28 = vadd.f32 1e-05, %v565_v25  ;;  %v638_v45 = vmul.f32 %v2108_v0, %v2108_v0  ;;  %v2132_v14 = vmul.f32 %v2110_v38, %v2110_v38 }
 0x160   : > { %v2079_v31 = vpop.xlane.xlu1 %685  ;;  %v2081_v32 = vpop.xlane.xlu0 %683  ;;  %v2136_v26 = vmul.f32 %v2122_v42, %v2122_v42 }
 0x161   : > { %1304 = vrsqrt.f32 %v570_v27  ;;  %v2138_v27 = vmul.f32 0.0078125, %v680_v23 }
 0x162   : > { %1306 = vrsqrt.f32 %v569_v28 }
 0x164   : > { %v766_v52 = vpop.xlane.xlu1 %765  ;;  %v764_v37 = vpop.xlane.xlu0 %763 }
 0x165   : > { %v776_v55 = vmul.f32 0.0078125, %v766_v52  ;;  %v775_v56 = vmul.f32 0.0078125, %v764_v37 }
 0x167   : > { %v784_v59 = vsub.f32 %v776_v55, %v780_v53  ;;  %v783_v60 = vsub.f32 %v775_v56, %v779_v54 }
 0x168   : > { %v770_v43 = vpop.xlane.xlu1 %769  ;;  %v768_v62 = vpop.xlane.xlu0 %767 }
 0x169   : > { %v788_v63 = vmax.f32 %v784_v59, 0.0  ;;  %v787_v1 = vmax.f32 %v783_v60, 0.0  ;;  %v778_v44 = vmul.f32 0.0078125, %v770_v43  ;;  %v777_v12 = vmul.f32 0.0078125, %v768_v62 }
 0x16a   : > { %v1301_v2 = vpop.eup %1300 }
 0x16b   : > { %v1303_v15 = vpop.eup %1302  ;;  %v580_v20 = vmul.f32 %v1301_v2, %v576_v61  ;;  %v792_v21 = vadd.f32 1e-05, %v788_v63  ;;  %v791_v22 = vadd.f32 1e-05, %v787_v1  ;;  %v786_v24 = vsub.f32 %v778_v44, %v782_v40 }
 0x16c   : > { %v579_v25 = vmul.f32 %v1303_v15, %v575_v39  ;;  %v785_v28 = vsub.f32 %v777_v12, %v781_v41  ;;  %v622_v52 = vpop.xlane.xlu1 %621  ;;  %v620_v37 = vpop.xlane.xlu0 %619 }
 0x16d   : > { %v588_v53 = vmul.f32 %v2088_v35, %v580_v20  ;;  %1308 = vrsqrt.f32 %v792_v21  ;;  %v790_v54 = vmax.f32 %v786_v24, 0.0  ;;  %v632_v55 = vmul.f32 0.0078125, %v622_v52 }
 0x16e   : > { %v1305_v56 = vpop.eup %1304  ;;  %v587_v59 = vmul.f32 %v2088_v35, %v579_v25  ;;  %1310 = vrsqrt.f32 %v791_v22  ;;  %v789_v60 = vmax.f32 %v785_v28, 0.0  ;;  %v631_v39 = vmul.f32 0.0078125, %v620_v37 }
 0x16f   : > { %v1307_v61 = vpop.eup %1306  ;;  %v596_v23 = vadd.f32 %v2091_v48, %v588_v53  ;;  %v582_v40 = vmul.f32 %v1305_v56, %v578_v46  ;;  %v794_v41 = vadd.f32 1e-05, %v790_v54  ;;  %v640_v43 = vsub.f32 %v632_v55, %v636_v47 }
 0x170   : > { %v595_v62 = vadd.f32 %v2091_v48, %v587_v59  ;;  %v581_v63 = vmul.f32 %v1307_v61, %v577_v49  ;;  %v793_v1 = vadd.f32 1e-05, %v789_v60  ;;  %v639_v44 = vsub.f32 %v631_v39, %v635_v3  ;;  %v626_v12 = vpop.xlane.xlu1 %625  ;;  %v624_v2 = vpop.xlane.xlu0 %623 }
 0x171   : > { %v590_v15 = vmul.f32 %v2088_v35, %v582_v40  ;;  %1312 = vrsqrt.f32 %v794_v41  ;;  %v644_v20 = vmax.f32 %v640_v43, 0.0  ;;  %v634_v21 = vmul.f32 0.0078125, %v626_v12  ;;  %600 = vst [vmem:[%s491_s16 + $0x8] sm:$0xff] %v596_v23 }
 0x172   : > { %v589_v46 = vmul.f32 %v2088_v35, %v581_v63  ;;  %1314 = vrsqrt.f32 %v793_v1  ;;  %v643_v47 = vmax.f32 %v639_v44, 0.0  ;;  %v633_v49 = vmul.f32 0.0078125, %v624_v2  ;;  %599 = vst [vmem:[%s491_s16] sm:$0xff] %v595_v62 }
 0x173   : > { %v598_v3 = vadd.f32 %v2091_v48, %v590_v15  ;;  %v707_v22 = vmul.f32 %v2138_v27, %v2138_v27  ;;  %v648_v24 = vadd.f32 1e-05, %v644_v20  ;;  %v642_v25 = vsub.f32 %v634_v21, %v638_v45 }
 0x174   : > { %v597_v28 = vadd.f32 %v2091_v48, %v589_v46  ;;  %v2155_v52 = vmul.f32 0.0078125, %v2079_v31  ;;  %v647_v37 = vadd.f32 1e-05, %v643_v47  ;;  %v641_v53 = vsub.f32 %v633_v49, %v2132_v14  ;;  %v694_v35 = vpop.xlane.xlu1 %693  ;;  %v692_v54 = vpop.xlane.xlu0 %691 }
 0x175   : > { %1316 = vrsqrt.f32 %v648_v24  ;;  %v646_v48 = vmax.f32 %v642_v25, 0.0  ;;  %v704_v31 = vmul.f32 0.0078125, %v694_v35  ;;  %v703_v45 = vmul.f32 0.0078125, %v692_v54  ;;  %602 = vst [vmem:[%s491_s16 + $0x18] sm:$0xff] %v598_v3 }
 0x176   : > { %v2167_v14 = vmul.f32 0.0078125, %v2081_v32  ;;  %1318 = vrsqrt.f32 %v647_v37  ;;  %v645_v55 = vmax.f32 %v641_v53, 0.0  ;;  %601 = vst [vmem:[%s491_s16 + $0x10] sm:$0xff] %v597_v28  ;;  %v2172_v56 = vrot.slane %v2075_v29, %v809_v36 }
 0x177   : > { %v650_v59 = vadd.f32 1e-05, %v646_v48  ;;  %v712_v60 = vsub.f32 %v704_v31, %v2136_v26  ;;  %v711_v39 = vsub.f32 %v703_v45, %v707_v22 }
 0x178   : > { %1509 = shalt.err (!%p1506_p7)
}
 0x179   : > { %s1510_s12 = scalar_lea.hbm %s2162_s18, 512  ;;  %s1514_s29 = scalar_lea.hbm %s2378_s6, 1024 }
 0x17a   : > { %p1511_p5 = scmp.ne.s32.totalorder %s2162_s18, %s1510_s12  ;;  %p1515_p9 = scmp.lt.s32.totalorder %s2162_s18, %s2378_s6 }
 0x17b   : > { %p1516_p10 = scmp.lt.s32.totalorder %s1514_s29, %s1510_s12 }
 0x17c   : > { %p1512_p8 = pnand %p1511_p5, %p2434_p1 }
 0x17d   : > { %p1517_p3 = por %p1516_p10, %p1515_p9 }
 0x17e   : > { %p1513_p12 = pneg %p1512_p8 }
 0x180   : > { %p1518_p2 = pnand %p1517_p3, %p1513_p12 }
 0x182   : > { %1521 = shalt.err (!%p1518_p2)
}
 0x183   : > { %s1665_s30 = smov 128   ;;  %s1666_s8 = smov 8   ;;  %v800_v32 = vsub.f32 %v1986_v4, %v2083_v33  ;;  %v710_v26 = vmul.f32 %v2155_v52, %v2155_v52  ;;  %v818_v61 = vrot.slane %v2077_v30, %v809_v36  ;;  %v649_v23 = vadd.f32 1e-05, %v645_v55  ;;  %v698_v40 = vpop.xlane.xlu1 %697  ;;  %v696_v41 = vpop.xlane.xlu0 %695 }
 0x184   : > { %1215 = dma.vmem_to_hbm [thread:$0]  (%p2434_p1), %s2164_s14, 512, %s2162_s18, %s828_s25, %s1665_s30, %s1665_s30, %s1666_s8   ;;  %1320 = vrsqrt.f32 %v650_v59  ;;  %v716_v43 = vmax.f32 %v712_v60, 0.0  ;;  %v715_v62 = vmax.f32 %v711_v39, 0.0  ;;  %v706_v63 = vmul.f32 0.0078125, %v698_v40  ;;  %v1309_v1 = vpop.eup %1308 }
 0x185   : > { %v799_v44 = vsub.f32 %v1988_v5, %v2085_v34  ;;  %v709_v4 = vmul.f32 %v2167_v14, %v2167_v14  ;;  %1322 = vrsqrt.f32 %v649_v23  ;;  %v705_v33 = vmul.f32 0.0078125, %v696_v41  ;;  %v1311_v12 = vpop.eup %1310  ;;  %s512_s16 = scalar_lea.vmem [#allocation15], %s1964_s23  ;;  %s2231_s18 = scalar_lea.hbm %s2381_s9, %s2146_s22 }
 0x186   : > { %v804_v2 = vmul.f32 %v1309_v1, %v800_v32  ;;  %v720_v15 = vadd.f32 1e-05, %v716_v43  ;;  %v719_v30 = vadd.f32 1e-05, %v715_v62  ;;  %v714_v36 = vsub.f32 %v706_v63, %v710_v26  ;;  %v1313_v34 = vpop.eup %1312  ;;  %s904_s14 = sshll.u32 %s512_s16, 4  ;;  %s2241_s25 = scalar_lea.vmem [#allocation12], %s1964_s23  ;;  %s2233_s14 = int_to_ptr.vmem [resolvable:$true] %s904_s14 }
 0x187   : > { %v803_v20 = vmul.f32 %v1311_v12, %v799_v44  ;;  %v665_v21 = vsub.s32 1, %v2072_v13  ;;  %v713_v46 = vsub.f32 %v705_v33, %v709_v4  ;;  %v802_v47 = vsub.f32 %v1992_v6, %v2095_v50  ;;  %v1315_v25 = vpop.eup %1314  ;;  %s872_s26 = sshll.u32 %s2241_s25, 4  ;;  %s843_s3 = scalar_lea.sflag [#allocation16], %s1961_s17  ;;  %s2283_s26 = int_to_ptr.vmem [resolvable:$true] %s872_s26 }
 0x188   : > { %v812_v49 = vmul.f32 %v2172_v56, %v804_v2  ;;  %1324 = vrsqrt.f32 %v720_v15  ;;  %v718_v5 = vmax.f32 %v714_v36, 0.0  ;;  %v801_v3 = vsub.f32 %v1994_v7, %v2097_v51  ;;  %v1317_v7 = vpop.eup %1316  ;;  %s1522_s19 = scalar_lea.vmem %s2233_s14, 512  ;;  %s1667_s24 = smov [#allocation15]  }
 0x189   : > { %v811_v22 = vmul.f32 %v2172_v56, %v803_v20  ;;  %1326 = vrsqrt.f32 %v719_v30  ;;  %v717_v24 = vmax.f32 %v713_v46, 0.0  ;;  %v806_v37 = vmul.f32 %v1313_v34, %v802_v47  ;;  %v1319_v55 = vpop.eup %1318  ;;  %p1523_p0 = scmp.ne.s32.totalorder %s2233_s14, %s1522_s19  ;;  %s1526_s12 = sshll.u32 %s1667_s24, 4  ;;  %s1527_s12 = int_to_ptr.vmem [resolvable:$false] %s1526_s12 }
 0x18a   : > { %v820_v28 = vadd.f32 %v818_v61, %v812_v49  ;;  %v722_v53 = vadd.f32 1e-05, %v718_v5  ;;  %v805_v54 = vmul.f32 %v1315_v25, %v801_v3  ;;  %v656_v50 = vsub.f32 %v1999_v8, %v2104_v57  ;;  %s1528_s27 = scalar_lea.vmem %s1527_s12, 1024  ;;  %p1529_p6 = scmp.lt.s32.totalorder %s2233_s14, %s1527_s12 }
 0x18b   : > { %v819_v35 = vadd.f32 %v818_v61, %v811_v22  ;;  %v721_v6 = vadd.f32 1e-05, %v717_v24  ;;  %v814_v48 = vmul.f32 %v2172_v56, %v806_v37  ;;  %v666_v31 = vrot.slane %v2075_v29, %v665_v21  ;;  %p1524_p4 = pnand %p1523_p0, %p2434_p1  ;;  %p1530_p13 = scmp.lt.s32.totalorder %s1528_s27, %s1522_s19 }
 0x18c   : > { %1328 = vrsqrt.f32 %v722_v53  ;;  %824 = vst [vmem:[%s512_s16 + $0x8] sm:$0xff] %v820_v28  ;;  %v655_v51 = vsub.f32 %v2001_v9, %v2106_v58  ;;  %v813_v45 = vmul.f32 %v2172_v56, %v805_v54  ;;  %v660_v57 = vmul.f32 %v1317_v7, %v656_v50 }
 0x18d   : > { %1330 = vrsqrt.f32 %v721_v6  ;;  %823 = vst [vmem:[%s512_s16] sm:$0xff] %v819_v35  ;;  %v822_v8 = vadd.f32 %v818_v61, %v814_v48  ;;  %v658_v9 = vsub.f32 %v2005_v10, %v2108_v0  ;;  %v737_v56 = vsub.s32 2, %v2072_v13  ;;  %p1525_p11 = pneg %p1524_p4  ;;  %p1531_p7 = por %p1530_p13, %p1529_p6 }
 0x18e   : > { %v821_v59 = vadd.f32 %v818_v61, %v813_v45  ;;  %v659_v60 = vmul.f32 %v1319_v55, %v655_v51  ;;  %v668_v58 = vmul.f32 %v666_v31, %v660_v57  ;;  %v657_v32 = vsub.f32 %v2007_v11, %v2110_v38 }
 0x18f   : > { %826 = vst [vmem:[%s512_s16 + $0x18] sm:$0xff] %v822_v8  ;;  %p1532_p5 = pnand %p1531_p7, %p1525_p11 }
 0x190   : > { %v667_v26 = vmul.f32 %v666_v31, %v659_v60  ;;  %825 = vst [vmem:[%s512_s16 + $0x10] sm:$0xff] %v821_v59  ;;  %672 = vst [vmem:[%s2241_s25 + $0x8] sm:$0xff] %v668_v58 }
 0x191   : > { %v1321_v39 = vpop.eup %1320 }
 0x192   : > { %v1323_v61 = vpop.eup %1322  ;;  %v662_v23 = vmul.f32 %v1321_v39, %v658_v9 }
 0x193   : > { %1535 = shalt.err (!%p1532_p5)
}
 0x194   : > { %s1536_s15 = scalar_lea.hbm %s2231_s18, 512  ;;  %s1540_s2 = scalar_lea.hbm %s2381_s9, 1024 }
 0x195   : > { %p1537_p8 = scmp.ne.s32.totalorder %s2231_s18, %s1536_s15  ;;  %p1541_p10 = scmp.lt.s32.totalorder %s2231_s18, %s2381_s9 }
 0x196   : > { %p1542_p3 = scmp.lt.s32.totalorder %s1540_s2, %s1536_s15 }
 0x197   : > { %p1538_p12 = pnand %p1537_p8, %p2434_p1 }
 0x198   : > { %p1543_p2 = por %p1542_p3, %p1541_p10 }
 0x199   : > { %p1539_p9 = pneg %p1538_p12 }
 0x19b   : > { %p1544_p0 = pnand %p1543_p2, %p1539_p9 }
 0x19d   : > { %1547 = shalt.err (!%p1544_p0)
}
 0x19e   : > { %1218 = dma.vmem_to_hbm [thread:$0]  (%p2434_p1), %s2233_s14, 512, %s2231_s18, %s843_s3, %s1665_s30, %s1665_s30, %s1666_s8   ;;  %v661_v10 = vmul.f32 %v1323_v61, %v657_v32  ;;  %v728_v11 = vsub.f32 %v2020_v16, %v2122_v42  ;;  %v670_v13 = vmul.f32 %v666_v31, %v662_v23  ;;  %v738_v0 = vrot.slane %v2075_v29, %v737_v56  ;;  %v1325_v38 = vpop.eup %1324 }
 0x19f   : > { %671 = vst [vmem:[%s2241_s25] sm:$0xff] %v667_v26  ;;  %v727_v40 = vsub.f32 %v2022_v17, %v2138_v27  ;;  %s2279_s19 = scalar_lea.hbm %s2379_s7, %s2146_s22  ;;  %v1327_v16 = vpop.eup %1326  ;;  %v730_v17 = vsub.f32 %v2026_v18, %v2155_v52  ;;  %s2291_s14 = scalar_lea.sflag [#allocation13], %s417_s28 }
 0x1a0   : > { %v669_v41 = vmul.f32 %v666_v31, %v661_v10  ;;  %v732_v42 = vmul.f32 %v1325_v38, %v728_v11  ;;  %674 = vst [vmem:[%s2241_s25 + $0x18] sm:$0xff] %v670_v13  ;;  %s1548_s18 = scalar_lea.vmem %s2283_s26, 512  ;;  %s1668_s3 = smov [#allocation12]  }
 0x1a1   : > { %v731_v29 = vmul.f32 %v1327_v16, %v727_v40  ;;  %p1549_p4 = scmp.ne.s32.totalorder %s2283_s26, %s1548_s18  ;;  %s1552_s24 = sshll.u32 %s1668_s3, 4  ;;  %s1553_s24 = int_to_ptr.vmem [resolvable:$false] %s1552_s24 }
 0x1a2   : > { %673 = vst [vmem:[%s2241_s25 + $0x10] sm:$0xff] %v669_v41  ;;  %v740_v27 = vmul.f32 %v738_v0, %v732_v42  ;;  %s1554_s12 = scalar_lea.vmem %s1553_s24, 1024  ;;  %p1555_p13 = scmp.lt.s32.totalorder %s2283_s26, %s1553_s24 }
 0x1a3   : > { %p1550_p11 = pnand %p1549_p4, %p2434_p1  ;;  %p1556_p7 = scmp.lt.s32.totalorder %s1554_s12, %s1548_s18 }
 0x1a5   : > { %p1551_p6 = pneg %p1550_p11  ;;  %p1557_p5 = por %p1556_p7, %p1555_p13 }
 0x1a7   : > { %p1558_p8 = pnand %p1557_p5, %p1551_p6 }
 0x1a9   : > { %1561 = shalt.err (!%p1558_p8)
}
 0x1aa   : > { %s1562_s13 = scalar_lea.hbm %s2279_s19, 512  ;;  %s1566_s27 = scalar_lea.hbm %s2379_s7, 1024 }
 0x1ab   : > { %p1563_p12 = scmp.ne.s32.totalorder %s2279_s19, %s1562_s13  ;;  %p1567_p3 = scmp.lt.s32.totalorder %s2279_s19, %s2379_s7 }
 0x1ac   : > { %p1568_p2 = scmp.lt.s32.totalorder %s1566_s27, %s1562_s13 }
 0x1ad   : > { %p1564_p9 = pnand %p1563_p12, %p2434_p1 }
 0x1ae   : > { %p1569_p0 = por %p1568_p2, %p1567_p3 }
 0x1af   : > { %p1565_p10 = pneg %p1564_p9 }
 0x1b1   : > { %p1570_p4 = pnand %p1569_p0, %p1565_p10 }
 0x1b3   : > { %1573 = shalt.err (!%p1570_p4)
}
 0x1b4   : > { %1216 = dma.vmem_to_hbm [thread:$0]  (%p2434_p1), %s2283_s26, 512, %s2279_s19, %s2291_s14, %s1665_s30, %s1665_s30, %s1666_s8   ;;  %v1329_v18 = vpop.eup %1328  ;;  %v729_v52 = vsub.f32 %v2028_v19, %v2167_v14  ;;  %v739_v43 = vmul.f32 %v738_v0, %v731_v29 }
 0x1b5   : > { %v1331_v62 = vpop.eup %1330  ;;  %s505_s29 = scalar_lea.vmem [#allocation14], %s1964_s23  ;;  %v734_v63 = vmul.f32 %v1329_v18, %v730_v17  ;;  %s2435_s11 = sld [smem:[#allocation32_spill]] }
 0x1b6   : > { %744 = vst [vmem:[%s505_s29 + $0x8] sm:$0xff] %v740_v27  ;;  %s888_s2 = sshll.u32 %s505_s29, 4  ;;  %743 = vst [vmem:[%s505_s29] sm:$0xff] %v739_v43  ;;  %v733_v1 = vmul.f32 %v1331_v62, %v729_v52  ;;  %s1669_s26 = smov [#allocation14]   ;;  %s2326_s2 = int_to_ptr.vmem [resolvable:$true] %s888_s2 }
 0x1b7   : > { %v742_v44 = vmul.f32 %v738_v0, %v734_v63  ;;  %s1574_s23 = scalar_lea.vmem %s2326_s2, 512  ;;  %s1578_s19 = sshll.u32 %s1669_s26, 4  ;;  %s1579_s19 = int_to_ptr.vmem [resolvable:$false] %s1578_s19 }
 0x1b8   : > { %v741_v4 = vmul.f32 %v738_v0, %v733_v1  ;;  %p1575_p11 = scmp.ne.s32.totalorder %s2326_s2, %s1574_s23  ;;  %s1580_s3 = scalar_lea.vmem %s1579_s19, 1024 }
 0x1b9   : > { %746 = vst [vmem:[%s505_s29 + $0x18] sm:$0xff] %v742_v44  ;;  %p1581_p7 = scmp.lt.s32.totalorder %s2326_s2, %s1579_s19  ;;  %p1582_p5 = scmp.lt.s32.totalorder %s1580_s3, %s1574_s23 }
 0x1ba   : > { %745 = vst [vmem:[%s505_s29 + $0x10] sm:$0xff] %v741_v4  ;;  %p1576_p6 = pnand %p1575_p11, %p2434_p1 }
 0x1bb   : > { %s2436_s0 = smov %s2435_s11  ;;  %s2324_s18 = scalar_lea.hbm %s2435_s11, %s2146_s22 }
 0x1bc   : > { %p1577_p13 = pneg %p1576_p6  ;;  %p1583_p8 = por %p1582_p5, %p1581_p7 }
 0x1be   : > { %p1584_p12 = pnand %p1583_p8, %p1577_p13 }
 0x1c0   : > { %1587 = shalt.err (!%p1584_p12)
}
 0x1c1   : > { %s1588_s22 = scalar_lea.hbm %s2324_s18, 512  ;;  %s1592_s13 = scalar_lea.hbm %s2436_s0, 1024 }
 0x1c2   : > { %p1589_p9 = scmp.ne.s32.totalorder %s2324_s18, %s1588_s22  ;;  %p1593_p2 = scmp.lt.s32.totalorder %s2324_s18, %s2436_s0 }
 0x1c3   : > { %p1594_p0 = scmp.lt.s32.totalorder %s1592_s13, %s1588_s22 }
 0x1c4   : > { %p1590_p10 = pnand %p1589_p9, %p2434_p1 }
 0x1c5   : > { %p1595_p4 = por %p1594_p0, %p1593_p2 }
 0x1c6   : > { %p1591_p3 = pneg %p1590_p10 }
 0x1c8   : > { %p1596_p11 = pnand %p1595_p4, %p1591_p3 }
 0x1ca   : > { %1599 = shalt.err (!%p1596_p11)
}
 0x1cb   : > { %1217 = dma.vmem_to_hbm [thread:$0]  (%p2434_p1), %s2326_s2, 512, %s2324_s18, %s2291_s14, %s1665_s30, %s1665_s30, %s1666_s8  }
 0x1cc PF: > { %s2437_s27 = sld [smem:[#allocation23_spill]] }
 0x1cd   : > { %s2438_s15 = sld [smem:[#allocation28_spill]] }
 0x1ce   : > { %s2439_s17 = sld [smem:[#allocation25_spill]] }
 0x1d2   : > { %s919_s29 = sand.u32 1, %s2437_s27  }
 0x1d3   : > { %p2440_p6 = scmp.ne.s32.totalorder %s2438_s15, 0  ;;  %s920_s20 = scalar_lea.sflag [#allocation4], %s919_s29 }
 0x1d4   : > { %p2441_p13 = scmp.ge.s32.totalorder %s2439_s17, 2 }
 0x1d6   : > { %p1244_p7 = pnand %p2441_p13, %p2440_p6 }
 0x1d8   : > { %p1245_p5 = pneg %p1244_p7 }
 0x1da   : > { %1629 = dma.done.wait (%p1245_p5), %s920_s20, 512  }
 0x1db   : > { %1631 = vsyncadd (%p1245_p5), %s920_s20, 4294966784  ;;  %s2442_s21 = sadd.s32 4294967294, %s2439_s17  }
 0x1dc   : > { %s928_s16 = sand.u32 1, %s2442_s21  }
 0x1dd   : > { %s929_s11 = scalar_lea.sflag [#allocation13], %s928_s16 }
 0x1de   : > { %1633 = dma.done.wait (%p1245_p5), %s929_s11, 1024  }
 0x1df   : > { %1635 = vsyncadd (%p1245_p5), %s929_s11, 4294966272  ;;  %s947_s23 = scalar_lea.sflag [#allocation16], %s919_s29 }
 0x1e0   : > { %1637 = dma.done.wait (%p1245_p5), %s947_s23, 512  }
 0x1e1   : > { %1639 = vsyncadd (%p1245_p5), %s947_s23, 4294966784  ;;  %s2443_s12 = sld [smem:[#allocation26_spill]]  ;;  %s2446_s30 = smov %s1646_s10 }
 0x1e2   : > { %s2444_s8 = sld [smem:[#allocation24_spill]] }
 0x1e3   : > { %s2445_s11 = sld [smem:[#allocation27_spill]] }
 0x1e7   : > { %p28_p1 = scmp.ge.s32.totalorder %s2443_s12, 4  }
 0x1e8   : > { %s2447_s10 = smov %s2444_s8 }
 0x1e9   :  { %30 = sbr.rel (!%p28_p1) target bundleno = 14 (0xe), region = 178 }
 0x1ee   :  { %952 = vsyncpa [#allocation3], 1 }
 0x1ef   :  { %954 = vsyncpa [#allocation3 + $0x1], 1 }
 0x1f0   :  { %955 = vsyncpa [#allocation6], 1 }
 0x1f1   :  { %956 = vsyncpa [#allocation4], 1 }
 0x1f2   :  { %958 = vsyncpa [#allocation4 + $0x1], 1 }
 0x1f3   :  { %959 = vsyncpa [#allocation13], 1 }
 0x1f4   :  { %961 = vsyncpa [#allocation13 + $0x1], 1 }
 0x1f5   :  { %962 = vsyncpa [#allocation16], 1 }
 0x1f6   :  { %964 = vsyncpa [#allocation16 + $0x1], 1 }

</bundles_post_ra>
